<compile_context>
chip_gen: v6e
topology: v6e:2x2x1
jax: 0.10.0
libtpu: 0.0.40
codegen_flags: <defaults>
</compile_context>

<pallas_src>
import numpy as np
import jax
import jax.numpy as jnp
from jax.experimental import pallas as pl
from jax.experimental.pallas import tpu as pltpu


def _softplus_kernel(b_ref, o_ref):
    """Numerically stable softplus on one (TR, npix) slab (VPU + EUP only)."""
    x = b_ref[...]
    o_ref[...] = jnp.maximum(x, 0.0) + jnp.log1p(jnp.exp(-jnp.abs(x)))


def _choose_row_block(rows: int, row_bytes: int, budget: int = 2 << 20) -> int:
    """Largest row-block that (a) divides `rows`, (b) is sublane-aligned
    (multiple of 8, or the whole array), (c) fits a ~2 MiB per-buffer budget,
    and (d) leaves >= 2 grid steps when possible (megacore sharding)."""
    cands = [
        d for d in range(1, rows + 1)
        if rows % d == 0
        and (d % 8 == 0 or d == rows)
        and d * row_bytes <= budget
    ]
    if not cands:
        # Whole array as a single block (always a legal block shape).
        return rows
    multi = [d for d in cands if rows // d >= 2]
    return max(multi) if multi else max(cands)


def base_cube_forward(base_cube: jax.Array) -> jax.Array:
    """
    Pallas implementation of BaseCube.forward with the default Softplus mapping.

    Args:
        base_cube: real array of shape (nchan, npix, npix)

    Returns:
        float32 array of shape (nchan, npix, npix): softplus(base_cube),
        the image cube in [Jy / arcsec^2].
    """
    assert base_cube.ndim == 3, "base_cube must be (nchan, npix, npix)"
    nchan, npix, npix2 = base_cube.shape
    assert npix == npix2, "base_cube must be square in the image plane"

    x = jnp.asarray(base_cube, dtype=jnp.float32)

    # Flatten channels into the row axis: elementwise op, so a (nchan*npix, npix)
    # view gives big, lane-dense, sublane-aligned slabs regardless of nchan.
    rows = nchan * npix
    x2 = x.reshape(rows, npix)

    row_bytes = npix * 4  # float32
    tr = _choose_row_block(rows, row_bytes)
    grid = (rows // tr,)

    # Last block dim == full array dim (npix) -> lane-layout always legal;
    # row dim is a multiple of 8 (or the full extent).
    spec = pl.BlockSpec((tr, npix), lambda i: (i, 0))

    out2 = pl.pallas_call(
        _softplus_kernel,
        out_shape=jax.ShapeDtypeStruct((rows, npix), jnp.float32),
        grid_spec=pltpu.PrefetchScalarGridSpec(
            num_scalar_prefetch=0,
            grid=grid,
            in_specs=[spec],
            out_specs=spec,
        ),
        compiler_params=pltpu.CompilerParams(
            dimension_semantics=("parallel",),
        ),
    )(x2)

    return out2.reshape(nchan, npix, npix)


if __name__ == "__main__":
    # Small deterministic example consistent with the module:
    # base_cube of shape (nchan, npix, npix); default init is 0.05 everywhere,
    # perturbed here so the softplus is exercised on both signs.
    nchan, npix = 4, 16
    key = jax.random.PRNGKey(0)
    base_cube = 0.05 + 0.5 * jax.random.normal(
        key, (nchan, npix, npix), dtype=jnp.float32
    )

    img = base_cube_forward(base_cube)
    img = jax.block_until_ready(img)

    # Reference semantics: torch.nn.Softplus() == elementwise softplus.
    ref = jax.nn.softplus(base_cube)
    np.testing.assert_allclose(np.asarray(img), np.asarray(ref),
                               rtol=1e-5, atol=1e-6)

    print("KERNEL_OK")
</pallas_src>

<mosaic_0001>
module attributes {stable_mosaic.version = 11 : i64} {
  func.func @_softplus_kernel(%arg0: i32, %arg1: memref<32x16xf32, #tpu.memory_space<vmem>>, %arg2: memref<32x16xf32, #tpu.memory_space<vmem>>) attributes {dimension_semantics = [#tpu.dimension_semantics<parallel>], iteration_bounds = array<i64: 2>, scalar_prefetch = 0 : i64, scratch_operands = 0 : i64, tpu.core_type = #tpu.core_type<tc>, window_params = [{transform_indices = @transform_0, window_bounds = array<i64: 32, 16>}, {transform_indices = @transform_1, window_bounds = array<i64: 32, 16>}]} {
    %c0 = arith.constant 0 : index
    %c0_0 = arith.constant 0 : index
    %0 = vector.load %arg1[%c0, %c0_0] : memref<32x16xf32, #tpu.memory_space<vmem>>, vector<32x16xf32>
    %cst = arith.constant 0.000000e+00 : f32
    %1 = vector.broadcast %cst : f32 to vector<32x16xf32>
    %2 = arith.maximumf %0, %1 : vector<32x16xf32>
    %3 = math.absf %0 : vector<32x16xf32>
    %cst_1 = arith.constant 0.000000e+00 : f32
    %4 = vector.broadcast %cst_1 : f32 to vector<32x16xf32>
    %5 = arith.subf %4, %3 : vector<32x16xf32>
    %6 = math.exp %5 : vector<32x16xf32>
    %7 = math.log1p %6 : vector<32x16xf32>
    %8 = arith.addf %2, %7 : vector<32x16xf32>
    %c0_2 = arith.constant 0 : index
    %c0_3 = arith.constant 0 : index
    %9 = vector.load %arg2[%c0_2, %c0_3] : memref<32x16xf32, #tpu.memory_space<vmem>>, vector<32x16xf32>
    tpu.vector_store %arg2[%c0_2, %c0_3], %8 {strides = array<i32>} : memref<32x16xf32, #tpu.memory_space<vmem>>, vector<32x16xf32>,
    return
  }
  func.func @transform_0(%arg0: i32) -> (i32, i32) {
    %c0_i32 = arith.constant 0 : i32
    %c0_i32_0 = arith.constant 0 : i32
    return %arg0, %c0_i32 : i32, i32
  }
  func.func @transform_1(%arg0: i32) -> (i32, i32) {
    %c0_i32 = arith.constant 0 : i32
    %c0_i32_0 = arith.constant 0 : i32
    return %arg0, %c0_i32 : i32, i32
  }
}

</mosaic_0001>

<bundles_post_ra>
// kernel: tpu_custom_call.1
= control target key start
LH: loop header
LB: loop body
LE: loop exit
PB: predicated region body
PF: predicated region fallthrough
CT: control target
= control target key end

     0   :  { %s298_s6 = smov 0   ;;  %s354_s0 = inlined_call_operand.vmem [shape: f32[64,16], index: 0, kind: input, shape index: {}]   ;;  %s355_s1 = inlined_call_operand.vmem [shape: f32[64,16], index: 1, kind: output, shape index: {}]  }
   0x1 LB: > { %s245_s7 = sadd.s32 4294967295, %s286_s6   ;;  %p249_p0 = scmp.ge.s32.totalorder %s286_s6, 1  ;;  %s286_s6 = sphi %s298_s6, %s11_s6  }
   0x2   : > { %p88_p1 = scmp.lt.s32.totalorder %s286_s6, 3 }
   0x4   : > { %p89_p2 = pnand %p249_p0, %p88_p1 }
   0x5   : > { %s250_s8 = sshll.u32 (!%p89_p2), %s245_s7, 2 }
   0x6   : > { %92 = sbr.rel (%p89_p2) target bundleno = 60 (0x3c), region = 24  ;;  %p109_p3 = scmp.lt.s32.totalorder (!%p89_p2), %s250_s8, 7 }
   0xb   : > { %s361_s8 = smov (!%p109_p3, %s250_s8), 7  ;;  %vm184_vm3 = vcmask 130048  }
   0xc   : > { %s251_s9 = sshll.u32 %s361_s8, 3 }
   0xd   : > { %s112_s12 = scalar_lea.vmem %s354_s0, %s251_s9  ;;  %s118_s15 = scalar_lea.vmem %s355_s1, %s251_s9 }
   0xe   : > { %v314_v0 = vld [vmem:[%s112_s12] sm:$0xff]  ;;  %v316_v1 = vld [vmem:[%s112_s12 + $0x8] sm:$0xff]  ;;  %v318_v2 = vld [vmem:[%s112_s12 + $0x10] sm:$0xff] }
   0xf   : > { %v320_v3 = vld [vmem:[%s112_s12 + $0x18] sm:$0xff]  ;;  %v128_v4 = vand.u32 2147483647, %v314_v0  ;;  %v129_v5 = vand.u32 2147483647, %v316_v1  ;;  %v124_v37 = vmax.f32 %v314_v0, 0.0 }
  0x10   : > { %v130_v6 = vand.u32 2147483647, %v318_v2  ;;  %v131_v7 = vand.u32 2147483647, %v320_v3  ;;  %v125_v43 = vmax.f32 %v316_v1, 0.0  ;;  %v126_v48 = vmax.f32 %v318_v2, 0.0 }
  0x11   : > { %v132_v8 = vsub.f32 0.0, %v128_v4  ;;  %v133_v9 = vsub.f32 0.0, %v129_v5  ;;  %v127_v55 = vmax.f32 %v320_v3, 0.0 }
  0x12   : > { %v134_v10 = vsub.f32 0.0, %v130_v6  ;;  %v135_v11 = vsub.f32 0.0, %v131_v7 }
  0x13   : > { %v136_v12 = vmul.f32 1.442695, %v132_v8  ;;  %v138_v13 = vmul.f32 1.442695, %v133_v9 }
  0x14   : > { %v140_v14 = vmul.f32 1.442695, %v134_v10  ;;  %v142_v15 = vmul.f32 1.442695, %v135_v11 }
  0x15   : > { %264 = vpow2.f32 %v136_v12 }
  0x16   : > { %266 = vpow2.f32 %v138_v13 }
  0x17   : > { %268 = vpow2.f32 %v140_v14 }
  0x18   : > { %270 = vpow2.f32 %v142_v15 }
  0x22   : > { %v265_v16 = vpop.eup %264 }
  0x23   : > { %v267_v17 = vpop.eup %266  ;;  %v144_v18 = vadd.f32 1.0, %v265_v16  ;;  %v147_v24 = vmul.f32 -0.5, %v265_v16  ;;  %v150_v29 = vand.u32 2147483647, %v265_v16 }
  0x24   : > { %v269_v19 = vpop.eup %268  ;;  %v153_v20 = vadd.f32 1.0, %v267_v17  ;;  %v156_v25 = vmul.f32 -0.5, %v267_v17  ;;  %v159_v31 = vand.u32 2147483647, %v267_v17 }
  0x25   : > { %v271_v21 = vpop.eup %270  ;;  %272 = vlog2.f32 %v144_v18  ;;  %v162_v22 = vadd.f32 1.0, %v269_v19  ;;  %v165_v26 = vmul.f32 -0.5, %v269_v19  ;;  %v148_v27 = vadd.f32 1.0, %v147_v24 }
  0x26   : > { %274 = vlog2.f32 %v153_v20  ;;  %v171_v23 = vadd.f32 1.0, %v271_v21  ;;  %v174_v28 = vmul.f32 -0.5, %v271_v21  ;;  %v157_v30 = vadd.f32 1.0, %v156_v25 }
  0x27   : > { %276 = vlog2.f32 %v162_v22  ;;  %v166_v32 = vadd.f32 1.0, %v165_v26  ;;  %v168_v33 = vand.u32 2147483647, %v269_v19  ;;  %v149_v34 = vmul.f32 %v265_v16, %v148_v27 }
  0x28   : > { %278 = vlog2.f32 %v171_v23  ;;  %v175_v35 = vadd.f32 1.0, %v174_v28  ;;  %vm327_vm0 = vcmp.lt.f32.partialorder %v150_v29, 0.0004427343  ;;  %v158_v39 = vmul.f32 %v267_v17, %v157_v30 }
  0x29   : > { %v177_v40 = vand.u32 2147483647, %v271_v21  ;;  %vm332_vm1 = vcmp.lt.f32.partialorder %v159_v31, 0.0004427343  ;;  %v167_v45 = vmul.f32 %v269_v19, %v166_v32  ;;  %vm169_vm2 = vcmp.lt.f32.partialorder %v168_v33, 0.0004427343 }
  0x2a   : > { %v176_v51 = vmul.f32 %v271_v21, %v175_v35 }
  0x2b   : > { %vm178_vm4 = vcmp.lt.f32.partialorder %v177_v40, 0.0004427343 }
  0x32   : > { %v273_v36 = vpop.eup %272 }
  0x33   : > { %v275_v41 = vpop.eup %274  ;;  %v146_v42 = vmul.f32 0.6931472, %v273_v36 }
  0x34   : > { %v277_v46 = vpop.eup %276  ;;  %v155_v47 = vmul.f32 0.6931472, %v275_v41 }
  0x35   : > { %v152_v49 = vsel %vm327_vm0, %v149_v34, %v146_v42  ;;  %v164_v50 = vmul.f32 0.6931472, %v277_v46  ;;  %v279_v52 = vpop.eup %278 }
  0x36   : > { %v180_v53 = vadd.f32 %v152_v49, %v124_v37  ;;  %v161_v54 = vsel %vm332_vm1, %v158_v39, %v155_v47  ;;  %v173_v58 = vmul.f32 0.6931472, %v279_v52 }
  0x37   : > { %v181_v56 = vadd.f32 %v161_v54, %v125_v43  ;;  %v170_v57 = vsel %vm169_vm2, %v167_v45, %v164_v50 }
  0x38   : > { %185 = vst.msk [vmem:[%s118_s15] sm:$0xff] %vm184_vm3, %v180_v53  ;;  %v182_v59 = vadd.f32 %v170_v57, %v126_v48  ;;  %v179_v60 = vsel %vm178_vm4, %v176_v51, %v173_v58 }
  0x39   : > { %186 = vst.msk [vmem:[%s118_s15 + $0x8] sm:$0xff] %vm184_vm3, %v181_v56  ;;  %v183_v61 = vadd.f32 %v179_v60, %v127_v55 }
  0x3a   : > { %187 = vst.msk [vmem:[%s118_s15 + $0x10] sm:$0xff] %vm184_vm3, %v182_v59 }
  0x3b   : > { %188 = vst.msk [vmem:[%s118_s15 + $0x18] sm:$0xff] %vm184_vm3, %v183_v61 }
  0x3c PF: > { %s11_s6 = sadd.s32 1, %s286_s6  }
  0x3d   : > { %p8_p4 = scmp.ge.s32.totalorder %s11_s6, 4  }
  0x3f   :  { %10 = sbr.rel (!%p8_p4) target bundleno = 1 (0x1), region = 54 }

</bundles_post_ra>
